<compile_context>
chip_gen: v5e
topology: v5e:2x2
jax: 0.10.0
libtpu: 0.0.40
codegen_flags: <defaults>
</compile_context>

<pallas_src>
import jax
import jax.numpy as jnp
from jax import lax
from jax.experimental import pallas as pl
from jax.experimental.pallas import tpu as pltpu


# ---------------------------------------------------------------------------
# small helpers
# ---------------------------------------------------------------------------
def _round_up(x, m):
    return ((x + m - 1) // m) * m


def _cdiv(a, b):
    return (a + b - 1) // b


def _vmem_capacity_bytes():
    """Physical VMEM of the current generation; conservative 64 MiB fallback (v7x)."""
    try:
        return int(pltpu.get_tpu_info().vmem_capacity_bytes)
    except Exception:
        return 64 << 20


def _vmem_estimate(tile_n, tile_i, H, bpe_c, bpe_o):
    """Rough VMEM bytes for one pipelined step (double-buffered blocks + scratch + temps)."""
    weights = 2 * (3 * tile_i * H * bpe_c)            # wgu_t (H,2ti) + wd_t (ti,H), 2 buffers
    x = 2 * tile_n * H * bpe_c                        # input tile, double-buffered
    out = 2 * tile_n * H * bpe_o                      # output tile, double-buffered
    rw = 2 * tile_n * 128 * 4                         # (tile_n,1) f32 block, lane-padded
    acc = tile_n * H * 4                              # f32 accumulator scratch
    inter = (tile_n * (2 * tile_i) * 4                # gu f32
             + tile_n * tile_i * 4                    # silu(g)*u f32 temp
             + tile_n * tile_i * bpe_c)               # h in compute dtype
    return weights + x + out + rw + acc + inter


# ---------------------------------------------------------------------------
# kernels
# ---------------------------------------------------------------------------
def _moe_mlp_compute(x_ref, wgu_ref, wd_ref):
    """Fused gate+up + SiLU + down projection for one (token tile, intermediate tile).

    x_ref  : (tile_n, H)        compute dtype
    wgu_ref: (H, 2*tile_i)      columns [0:tile_i] = gate block, [tile_i:] = up block
    wd_ref : (tile_i, H)        rows of w_down.T (MXU-natural (K, N))
    returns: (tile_n, H) f32 partial down-projection
    """
    x = x_ref[...]
    # single fused gate+up matmul, MXU-natural operands, f32 accumulation
    gu = lax.dot_general(x, wgu_ref[...], (((1,), (0,)), ((), ())),
                         preferred_element_type=jnp.float32)    # (tile_n, 2*tile_i)
    ti = wd_ref.shape[0]                                        # static block size
    g = gu[:, :ti]
    u = gu[:, ti:]
    h = (g * jax.nn.sigmoid(g) * u).astype(x.dtype)             # SiLU(g) * u
    return lax.dot_general(h, wd_ref[...], (((1,), (0,)), ((), ())),
                           preferred_element_type=jnp.float32)  # (tile_n, H)


def _moe_mlp_kernel_resident(x_ref, wgu_ref, wd_ref, rw_ref, o_ref):
    """1-D grid over token tiles; full expert weights resident in VMEM (constant index_map)."""
    o_ref[...] = (_moe_mlp_compute(x_ref, wgu_ref, wd_ref) * rw_ref[...]).astype(o_ref.dtype)


def _moe_mlp_kernel_ktiled(x_ref, wgu_ref, wd_ref, rw_ref, o_ref, acc_ref):
    """2-D grid (token tiles, intermediate tiles); f32 VMEM accumulator over the k axis."""
    k = pl.program_id(1)

    @pl.when(k == 0)
    def _():
        acc_ref[...] = jnp.zeros_like(acc_ref)

    acc_ref[...] += _moe_mlp_compute(x_ref, wgu_ref, wd_ref)

    @pl.when(k == pl.num_programs(1) - 1)
    def _():
        # per-token routing-weight scale (SPDenseWeightedLinear)
        o_ref[...] = (acc_ref[...] * rw_ref[...]).astype(o_ref.dtype)


# ---------------------------------------------------------------------------
# offline weight preparation (call ONCE at model-load / parameter-prep time)
# ---------------------------------------------------------------------------
def prepare_ss_qwen2_moe_mlp_weights(w_gate, w_up, w_down, *,
                                     compute_dtype=jnp.bfloat16,
                                     tile_i=None,
                                     tile_n_hint=512,
                                     out_itemsize=4):
    """Cast, pad, fuse and lay out the expert weights for the Pallas kernel.

    w_gate, w_up : (I, H)  nn.Linear(H, I, bias=False).weight
    w_down       : (H, I)  nn.Linear(I, H, bias=False).weight
    tile_i       : intermediate tile (multiple of 256). None = auto: full residency if the
                   expert fits the VMEM budget, otherwise 512.
    Returns a dict consumed by ss_qwen2_moe_mlp().
    """
    I, H = w_gate.shape
    assert w_up.shape == (I, H) and w_down.shape == (H, I)
    compute_dtype = jnp.dtype(compute_dtype)
    bpe_c = compute_dtype.itemsize

    if tile_i is None:
        budget = _vmem_capacity_bytes() - (8 << 20)
        i_res = _round_up(I, 256)
        if _vmem_estimate(tile_n_hint, i_res, H, bpe_c, out_itemsize) <= budget:
            tile_i = i_res                 # whole expert resident in VMEM (v5e/v6e typical)
        else:
            tile_i = 512                   # k-tiled reduction (v7x / very large experts)
    tile_i = max(256, _round_up(int(tile_i), 256))

    I_pad = _round_up(I, tile_i)
    pad_i = I_pad - I

    wg = w_gate.astype(compute_dtype)
    wu = w_up.astype(compute_dtype)
    wd_t = jnp.transpose(w_down).astype(compute_dtype)        # (I, H) == w_down.T
    if pad_i:
        # zero rows contribute exactly zero through silu(0)*0 and the zero wd_t rows
        wg = jnp.pad(wg, ((0, pad_i), (0, 0)))
        wu = jnp.pad(wu, ((0, pad_i), (0, 0)))
        wd_t = jnp.pad(wd_t, ((0, pad_i), (0, 0)))

    # Block-interleave gate/up at tile_i granularity so one (H, 2*tile_i) column tile
    # carries [gate_k | up_k]; transpose once to the MXU-natural (K, N) layout.
    nb = I_pad // tile_i
    wgu = jnp.concatenate([wg.reshape(nb, tile_i, H), wu.reshape(nb, tile_i, H)],
                          axis=1).reshape(2 * I_pad, H)
    wgu_t = jnp.transpose(wgu)                                 # (H, 2*I_pad)

    return dict(wgu_t=wgu_t, wd_t=wd_t, tile_i=int(tile_i), I=int(I),
                I_pad=int(I_pad), H=int(H), compute_dtype=compute_dtype)


# ---------------------------------------------------------------------------
# forward wrapper
# ---------------------------------------------------------------------------
def ss_qwen2_moe_mlp(hidden_states, input_idx, routing_weights, prepared, *, tile_n=512):
    """Pallas implementation of SSQwen2MoeMLP.forward using pre-prepared weights.

    hidden_states  : (T, H)
    input_idx      : (N,) int32 — tokens routed to this expert
    routing_weights: (N, 1) or (N,) — per-token routing weight
    prepared       : output of prepare_ss_qwen2_moe_mlp_weights()
    returns        : (N, H) in hidden_states.dtype
    """
    H, I_pad, tile_i = prepared["H"], prepared["I_pad"], prepared["tile_i"]
    compute_dtype = prepared["compute_dtype"]
    wgu_t, wd_t = prepared["wgu_t"], prepared["wd_t"]

    out_dtype = hidden_states.dtype
    N = int(input_idx.shape[0])
    bpe_c = jnp.dtype(compute_dtype).itemsize
    bpe_o = jnp.dtype(out_dtype).itemsize

    # token-tile alignment: packed sublane tile of the compute dtype
    align = 32 if bpe_c == 1 else (16 if bpe_c == 2 else 8)

    # --- token tile selection ------------------------------------------------
    Np0 = _round_up(N, align)
    tile_n_eff = min(_round_up(max(1, tile_n), align), Np0)
    # guarantee >= 2 token tiles when the token count allows it, so the 'parallel'
    # axis can be split across v7x's two TensorCores (and halves per-core weight reads).
    if tile_n_eff >= Np0 and Np0 >= 2 * align:
        tile_n_eff = _round_up(_cdiv(Np0, 2), align)
    # shrink the token tile if the per-step VMEM estimate exceeds the on-chip budget
    capacity = _vmem_capacity_bytes()
    budget = capacity - (2 << 20)
    while (_vmem_estimate(tile_n_eff, tile_i, H, bpe_c, bpe_o) > budget
           and tile_n_eff > align):
        tile_n_eff = max(align, _round_up(tile_n_eff // 2, align))

    Np = _round_up(N, tile_n_eff)
    n_tiles = Np // tile_n_eff
    k_tiles = I_pad // tile_i

    # --- glue: token gather + padding (plain JAX) -----------------------------
    # TODO(synk): fuse the gather via PrefetchScalarGridSpec(num_scalar_prefetch=1) with
    # input_idx in SMEM + per-row DMA from hidden_states in pl.ANY, to avoid the (N, H)
    # HBM round trip for prefill-sized N.
    x = jnp.take(hidden_states, input_idx, axis=0).astype(compute_dtype)    # (N, H)
    rw = jnp.reshape(routing_weights, (N, 1)).astype(jnp.float32)
    pad_n = Np - N
    if pad_n:
        x = jnp.pad(x, ((0, pad_n), (0, 0)))
        rw = jnp.pad(rw, ((0, pad_n), (0, 0)))

    vmem_est = _vmem_estimate(tile_n_eff, tile_i, H, bpe_c, bpe_o)
    vmem_limit = int(min(capacity - (2 << 20), max(vmem_est + (8 << 20), 32 << 20)))

    if k_tiles == 1:
        # Weights fully resident: constant index_map -> DMA'd from HBM once, reused for
        # every token tile.  1-D grid over token tiles, no accumulator needed.
        out = pl.pallas_call(
            _moe_mlp_kernel_resident,
            out_shape=jax.ShapeDtypeStruct((Np, H), out_dtype),
            grid_spec=pltpu.PrefetchScalarGridSpec(
                num_scalar_prefetch=0,
                grid=(n_tiles,),
                in_specs=[
                    pl.BlockSpec((tile_n_eff, H), lambda n: (n, 0)),     # x tile
                    pl.BlockSpec((H, 2 * tile_i), lambda n: (0, 0)),     # fused Wg|Wu (resident)
                    pl.BlockSpec((tile_i, H), lambda n: (0, 0)),         # Wd.T (resident)
                    pl.BlockSpec((tile_n_eff, 1), lambda n: (n, 0)),     # routing weights
                ],
                out_specs=pl.BlockSpec((tile_n_eff, H), lambda n: (n, 0)),
            ),
            compiler_params=pltpu.CompilerParams(
                dimension_semantics=("parallel",),
                vmem_limit_bytes=vmem_limit,
            ),
        )(x, wgu_t, wd_t, rw)
    else:
        # k-tiled reduction over the intermediate dim (innermost, "arbitrary");
        # token axis stays "parallel" for the megacore split.
        out = pl.pallas_call(
            _moe_mlp_kernel_ktiled,
            out_shape=jax.ShapeDtypeStruct((Np, H), out_dtype),
            grid_spec=pltpu.PrefetchScalarGridSpec(
                num_scalar_prefetch=0,
                grid=(n_tiles, k_tiles),
                in_specs=[
                    pl.BlockSpec((tile_n_eff, H), lambda n, k: (n, 0)),  # x tile
                    pl.BlockSpec((H, 2 * tile_i), lambda n, k: (0, k)),  # fused Wg|Wu column tile
                    pl.BlockSpec((tile_i, H), lambda n, k: (k, 0)),      # Wd.T row tile
                    pl.BlockSpec((tile_n_eff, 1), lambda n, k: (n, 0)),  # routing weights
                ],
                out_specs=pl.BlockSpec((tile_n_eff, H), lambda n, k: (n, 0)),
                scratch_shapes=[pltpu.VMEM((tile_n_eff, H), jnp.float32)],
            ),
            compiler_params=pltpu.CompilerParams(
                dimension_semantics=("parallel", "arbitrary"),
                vmem_limit_bytes=vmem_limit,
            ),
        )(x, wgu_t, wd_t, rw)

    # mirror the PyTorch `[0:input_idx.shape[0]]` slice (also drops padded rows)
    return out[:N]


def ss_qwen2_moe_mlp_raw(hidden_states, input_idx, routing_weights,
                         w_gate, w_up, w_down, *,
                         compute_dtype=None, tile_n=512, tile_i=None):
    """Convenience wrapper that preps weights per call.

    NOTE: weight preparation (cast / transpose / pad / gate-up fuse) should be hoisted to
    model-load time via prepare_ss_qwen2_moe_mlp_weights(); this wrapper pays that HBM
    read+write on every forward call and is only provided for drop-in compatibility.
    """
    if compute_dtype is None:
        compute_dtype = jnp.bfloat16       # MXU-friendly default; accumulation stays f32
    prepared = prepare_ss_qwen2_moe_mlp_weights(
        w_gate, w_up, w_down, compute_dtype=compute_dtype, tile_i=tile_i,
        out_itemsize=jnp.dtype(hidden_states.dtype).itemsize)
    return ss_qwen2_moe_mlp(hidden_states, input_idx, routing_weights, prepared,
                            tile_n=tile_n)


# ---------------------------------------------------------------------------
# reference + test
# ---------------------------------------------------------------------------
def _reference(hidden_states, input_idx, routing_weights, w_gate, w_up, w_down):
    x = hidden_states[input_idx]
    g = x @ w_gate.T
    g = g * jax.nn.sigmoid(g)
    u = x @ w_up.T
    h = g * u
    out = (h @ w_down.T) * jnp.reshape(routing_weights, (-1, 1))
    return out[: input_idx.shape[0]]


if __name__ == "__main__":
    # small shapes consistent with the module (I deliberately not a multiple of 256 to
    # exercise intermediate-dim padding; N not a multiple of the sublane tile)
    T = 32          # total tokens in the batch
    N = 13          # tokens routed to this expert
    H = 256         # config.hidden_size
    I = 448         # per-expert intermediate_size

    key = jax.random.PRNGKey(0)
    k1, k2, k3, k4, k5, k6 = jax.random.split(key, 6)

    hidden_states = jax.random.normal(k1, (T, H), dtype=jnp.float32)
    input_idx = jax.random.permutation(k2, T)[:N].astype(jnp.int32)
    routing_weights = jax.nn.softmax(jax.random.normal(k3, (N,)), axis=0)[:, None]

    # nn.Linear weight shapes: (out_features, in_features)
    w_gate = 0.02 * jax.random.normal(k4, (I, H), dtype=jnp.float32)
    w_up = 0.02 * jax.random.normal(k5, (I, H), dtype=jnp.float32)
    w_down = 0.02 * jax.random.normal(k6, (H, I), dtype=jnp.float32)

    ref = _reference(hidden_states, input_idx, routing_weights, w_gate, w_up, w_down)

    # --- 1) f32 compute path, forced k-tiling (tile_i=256 -> 2 k tiles, tile_n=8 ->
    #        2 token tiles): exact comparison against the reference.
    prep_f32 = prepare_ss_qwen2_moe_mlp_weights(
        w_gate, w_up, w_down, compute_dtype=jnp.float32, tile_i=256)
    out_f32 = ss_qwen2_moe_mlp(hidden_states, input_idx, routing_weights,
                               prep_f32, tile_n=8)
    out_f32 = jax.block_until_ready(out_f32)
    assert out_f32.shape == (N, H)
    assert jnp.allclose(out_f32, ref, atol=1e-5, rtol=1e-4), "f32 mismatch vs reference"

    # --- 2) default path: weights prepped once (bf16 compute, auto tile_i -> fully
    #        VMEM-resident weights, f32 accumulation, f32 output).
    prep_bf16 = prepare_ss_qwen2_moe_mlp_weights(w_gate, w_up, w_down)  # bf16 default
    out_def = ss_qwen2_moe_mlp(hidden_states, input_idx, routing_weights, prep_bf16)
    out_def = jax.block_until_ready(out_def)
    assert out_def.shape == (N, H)
    scale = jnp.max(jnp.abs(ref)) + 1e-6
    err = jnp.max(jnp.abs(out_def - ref))
    assert float(err / scale) < 0.08, "bf16-compute path deviates too much from reference"

    # --- 3) bf16 activations via the drop-in raw wrapper (bf16 output).
    out_raw = ss_qwen2_moe_mlp_raw(hidden_states.astype(jnp.bfloat16), input_idx,
                                   routing_weights,
                                   w_gate.astype(jnp.bfloat16),
                                   w_up.astype(jnp.bfloat16),
                                   w_down.astype(jnp.bfloat16))
    out_raw = jax.block_until_ready(out_raw)
    assert out_raw.shape == (N, H)
    err = jnp.max(jnp.abs(out_raw.astype(jnp.float32) - ref))
    assert float(err / scale) < 0.08, "bf16 raw path deviates too much from reference"

    print("KERNEL_OK")
</pallas_src>

<mosaic_0001>
module attributes {stable_mosaic.version = 11 : i64} {
  func.func @_moe_mlp_kernel_ktiled(%arg0: i32, %arg1: i32, %arg2: memref<8x256xf32, #tpu.memory_space<vmem>>, %arg3: memref<256x512xf32, #tpu.memory_space<vmem>>, %arg4: memref<256x256xf32, #tpu.memory_space<vmem>>, %arg5: memref<8x1xf32, #tpu.memory_space<vmem>>, %arg6: memref<8x256xf32, #tpu.memory_space<vmem>>, %arg7: memref<8x256xf32, #tpu.memory_space<vmem>>) attributes {dimension_semantics = [#tpu.dimension_semantics<parallel>, #tpu.dimension_semantics<arbitrary>], iteration_bounds = array<i64: 2, 2>, scalar_prefetch = 0 : i64, scratch_operands = 1 : i64, tpu.core_type = #tpu.core_type<tc>, window_params = [{transform_indices = @transform_0, window_bounds = array<i64: 8, 256>}, {transform_indices = @transform_1, window_bounds = array<i64: 256, 512>}, {transform_indices = @transform_2, window_bounds = array<i64: 256, 256>}, {transform_indices = @transform_3, window_bounds = array<i64: 8, 1>}, {transform_indices = @transform_4, window_bounds = array<i64: 8, 256>}]} {
    %c0_i32 = arith.constant 0 : i32
    %0 = arith.cmpi eq, %arg1, %c0_i32 : i32
    %1 = arith.extui %0 : i1 to i32
    %c0_i32_0 = arith.constant 0 : i32
    %2 = arith.cmpi ne, %1, %c0_i32_0 : i32
    scf.if %2 {
      %cst_13 = arith.constant 0.000000e+00 : f32
      %23 = vector.broadcast %cst_13 : f32 to vector<8x256xf32>
      %c0_14 = arith.constant 0 : index
      %c0_15 = arith.constant 0 : index
      %24 = vector.load %arg7[%c0_14, %c0_15] : memref<8x256xf32, #tpu.memory_space<vmem>>, vector<8x256xf32>
      tpu.vector_store %arg7[%c0_14, %c0_15], %23 {strides = array<i32>} : memref<8x256xf32, #tpu.memory_space<vmem>>, vector<8x256xf32>,
    } else {
    }
    %c0 = arith.constant 0 : index
    %c0_1 = arith.constant 0 : index
    %3 = vector.load %arg7[%c0, %c0_1] : memref<8x256xf32, #tpu.memory_space<vmem>>, vector<8x256xf32>
    %c0_2 = arith.constant 0 : index
    %c0_3 = arith.constant 0 : index
    %4 = vector.load %arg2[%c0_2, %c0_3] : memref<8x256xf32, #tpu.memory_space<vmem>>, vector<8x256xf32>
    %c0_4 = arith.constant 0 : index
    %c0_5 = arith.constant 0 : index
    %5 = vector.load %arg3[%c0_4, %c0_5] : memref<256x512xf32, #tpu.memory_space<vmem>>, vector<256x512xf32>
    %cst = arith.constant dense<0.000000e+00> : vector<8x512xf32>
    %6 = tpu.matmul %4, %5, %cst {dimension_numbers = #tpu.dot_dimension_numbers<[1], [0], [0], [1], [0, 0, 1, 1], [], []>} : vector<8x256xf32>, vector<256x512xf32>, vector<8x512xf32> -> vector<8x512xf32>
    %7 = vector.extract_strided_slice %6 {offsets = [0, 0], sizes = [8, 256], strides = [1, 1]} : vector<8x512xf32> to vector<8x256xf32>
    %8 = vector.extract_strided_slice %6 {offsets = [0, 256], sizes = [8, 256], strides = [1, 1]} : vector<8x512xf32> to vector<8x256xf32>
    %9 = arith.negf %7 : vector<8x256xf32>
    %10 = math.exp %9 : vector<8x256xf32>
    %cst_6 = arith.constant 1.000000e+00 : f32
    %11 = vector.broadcast %cst_6 : f32 to vector<8x256xf32>
    %12 = arith.addf %11, %10 : vector<8x256xf32>
    %13 = arith.divf %11, %12 : vector<8x256xf32>
    %14 = arith.mulf %7, %13 : vector<8x256xf32>
    %15 = arith.mulf %14, %8 : vector<8x256xf32>
    %c0_7 = arith.constant 0 : index
    %c0_8 = arith.constant 0 : index
    %16 = vector.load %arg4[%c0_7, %c0_8] : memref<256x256xf32, #tpu.memory_space<vmem>>, vector<256x256xf32>
    %cst_9 = arith.constant dense<0.000000e+00> : vector<8x256xf32>
    %17 = tpu.matmul %15, %16, %cst_9 {dimension_numbers = #tpu.dot_dimension_numbers<[1], [0], [0], [1], [0, 0, 1, 1], [], []>} : vector<8x256xf32>, vector<256x256xf32>, vector<8x256xf32> -> vector<8x256xf32>
    %18 = arith.addf %3, %17 : vector<8x256xf32>
    %c0_10 = arith.constant 0 : index
    %c0_11 = arith.constant 0 : index
    %19 = vector.load %arg7[%c0_10, %c0_11] : memref<8x256xf32, #tpu.memory_space<vmem>>, vector<8x256xf32>
    tpu.vector_store %arg7[%c0_10, %c0_11], %18 {strides = array<i32>} : memref<8x256xf32, #tpu.memory_space<vmem>>, vector<8x256xf32>,
    %c1_i32 = arith.constant 1 : i32
    %20 = arith.cmpi eq, %arg1, %c1_i32 : i32
    %21 = arith.extui %20 : i1 to i32
    %c0_i32_12 = arith.constant 0 : i32
    %22 = arith.cmpi ne, %21, %c0_i32_12 : i32
    scf.if %22 {
      %c0_13 = arith.constant 0 : index
      %c0_14 = arith.constant 0 : index
      %23 = vector.load %arg7[%c0_13, %c0_14] : memref<8x256xf32, #tpu.memory_space<vmem>>, vector<8x256xf32>
      %c0_15 = arith.constant 0 : index
      %c0_16 = arith.constant 0 : index
      %24 = vector.load %arg5[%c0_15, %c0_16] : memref<8x1xf32, #tpu.memory_space<vmem>>, vector<8x1xf32>
      %25 = vector.broadcast %24 : vector<8x1xf32> to vector<8x256xf32>
      %26 = arith.mulf %23, %25 : vector<8x256xf32>
      %c0_17 = arith.constant 0 : index
      %c0_18 = arith.constant 0 : index
      %27 = vector.load %arg6[%c0_17, %c0_18] : memref<8x256xf32, #tpu.memory_space<vmem>>, vector<8x256xf32>
      tpu.vector_store %arg6[%c0_17, %c0_18], %26 {strides = array<i32>} : memref<8x256xf32, #tpu.memory_space<vmem>>, vector<8x256xf32>,
    } else {
    }
    return
  }
  func.func @transform_0(%arg0: i32, %arg1: i32) -> (i32, i32) {
    %c0_i32 = arith.constant 0 : i32
    %c0_i32_0 = arith.constant 0 : i32
    return %arg0, %c0_i32 : i32, i32
  }
  func.func @transform_1(%arg0: i32, %arg1: i32) -> (i32, i32) {
    %c0_i32 = arith.constant 0 : i32
    %c0_i32_0 = arith.constant 0 : i32
    return %c0_i32, %arg1 : i32, i32
  }
  func.func @transform_2(%arg0: i32, %arg1: i32) -> (i32, i32) {
    %c0_i32 = arith.constant 0 : i32
    %c0_i32_0 = arith.constant 0 : i32
    return %arg1, %c0_i32 : i32, i32
  }
  func.func @transform_3(%arg0: i32, %arg1: i32) -> (i32, i32) {
    %c0_i32 = arith.constant 0 : i32
    %c0_i32_0 = arith.constant 0 : i32
    return %arg0, %c0_i32 : i32, i32
  }
  func.func @transform_4(%arg0: i32, %arg1: i32) -> (i32, i32) {
    %c0_i32 = arith.constant 0 : i32
    %c0_i32_0 = arith.constant 0 : i32
    return %arg0, %c0_i32 : i32, i32
  }
}

</mosaic_0001>

<bundles_post_ra>
// kernel: tpu_custom_call.1
= control target key start
LH: loop header
LB: loop body
LE: loop exit
PB: predicated region body
PF: predicated region fallthrough
CT: control target
= control target key end

     0   :  { %s1869_s0 = inlined_call_operand.hbm [shape: f32[16,256], index: 0, kind: input, shape index: {}]   ;;  %s1870_s1 = inlined_call_operand.hbm [shape: f32[256,1024], index: 1, kind: input, shape index: {}]   ;;  %s1871_s2 = inlined_call_operand.hbm [shape: f32[512,256], index: 2, kind: input, shape index: {}]   ;;  %s1872_s3 = inlined_call_operand.vmem [shape: f32[16,1], index: 3, kind: input, shape index: {}]   ;;  %s1873_s4 = inlined_call_operand.hbm [shape: f32[16,256], index: 4, kind: output, shape index: {}]  }
   0x1   :  { %1884 = sst [smem:[#allocation23_spill]] %s1870_s1 }
   0x2   :  { %1885 = sst [smem:[#allocation24_spill]] %s1873_s4 }
   0x3   :  { %9 = vsyncpa [#allocation4], 0 }
   0x4   :  { %11 = vsyncpa [#allocation4 + $0x1], 0 }
   0x5   :  { %12 = vsyncpa [#allocation7], 0 }
   0x6   :  { %14 = vsyncpa [#allocation7 + $0x1], 0 }
   0x7   :  { %15 = vsyncpa [#allocation5], 0 }
   0x8   :  { %17 = vsyncpa [#allocation5 + $0x1], 0  ;;  %s1398_s15 = smov 0   ;;  %s1400_s16 = smov 0  }
   0x9   :  { %s1402_s17 = smov 0   ;;  %s1404_s18 = smov 0  }
   0xa   :  { %s1406_s19 = smov 0   ;;  %s1408_s20 = smov 0  }
   0xb   :  { %s1410_s21 = smov 0   ;;  %s1412_s22 = smov 0  }
   0xc   :  { %s1414_s23 = smov 0   ;;  %s1416_s24 = smov 0  }
   0xd   :  { %s1418_s25 = smov 0  }
   0xe LB: > { %1886 = sst [smem:[#allocation13_spill]] %s1336_s18  ;;  %p50_p0 = scmp.eq.s32.totalorder %s1364_s25, 0  ;;  %s1364_s25 = sphi %s1418_s25, %s23_s25   ;;  %s1360_s24 = sphi %s1416_s24, %s1917_s24   ;;  %s1356_s23 = sphi %s1414_s23, %s1924_s23   ;;  %s1352_s22 = sphi %s1412_s22, %s1915_s22   ;;  %s1348_s21 = sphi %s1410_s21, %s1923_s21   ;;  %s1344_s20 = sphi %s1408_s20, %s1914_s20   ;;  %s1340_s19 = sphi %s1406_s19, %s1922_s19   ;;  %s1336_s18 = sphi %s1404_s18, %s1921_s18   ;;  %s1332_s17 = sphi %s1402_s17, %s1920_s17   ;;  %s1328_s16 = sphi %s1400_s16, %s1919_s16   ;;  %s1324_s15 = sphi %s1398_s15, %s1918_s15  }
   0xf   : > { %1887 = sst [smem:[#allocation14_spill]] %s1344_s20  ;;  %s68_s26 = sadd.s32 1, %s1332_s17 }
  0x10   : > { %1888 = sst [smem:[#allocation15_spill]] %s1348_s21  ;;  %p75_p1 = scmp.ne.s32.totalorder %s1332_s17, %s1328_s16 }
  0x11   : > { %1889 = sst [smem:[#allocation16_spill]] %s1360_s24  ;;  %p1042_p2 = scmp.lt.s32.totalorder %s1364_s25, 4 }
  0x12   : > { %s203_s27 = sand.u32 1, %s1364_s25   ;;  %p77_p3 = por %p75_p1, %p50_p0 }
  0x13   : > { %s1874_s28 = sand.u32 1, %s1332_s17   ;;  %s1016_s29 = sshll.u32 %s1356_s23, 5 }
  0x14   : > { %s993_s30 = sshll.u32 %s1874_s28, 10  ;;  %s1890_s1 = sld [smem:[#allocation23_spill]] }
  0x15   : > { %s207_s9 = scalar_lea.vmem [#allocation6], %s993_s30  ;;  %p1470_p4 = pnand %p1042_p2, %p77_p3 }
  0x16   : > { %s215_s10 = sshll.u32 %s207_s9, 4  ;;  %s1474_s12 = scalar_lea.sflag [#allocation7], %s203_s27  ;;  %s216_s10 = int_to_ptr.vmem [resolvable:$true] %s215_s10 }
  0x17   : > { %s1366_s13 = smov 1024   ;;  %s1367_s14 = smov 512  }
  0x18   : > { %p1000_p5 = scmp.ge.s32.totalorder %s1364_s25, 1  ;;  %p253_p6 = scmp.lt.s32.totalorder %s1364_s25, 5 }
  0x19   : > { %s1486_s30 = sadd.s32 4294967295, %s1364_s25   ;;  %s987_s5 = sadd.s32 4294967294, %s1364_s25  }
  0x1a   : > { %s212_s7 = scalar_lea.hbm %s1890_s1, %s1016_s29  ;;  %s1368_s29 = smov 32  }
  0x1b   : > { %s213_s8 = sshll.u32 %s212_s7, 4  ;;  %p1481_p7 = pnand %p1000_p5, %p253_p6  ;;  %s214_s8 = int_to_ptr.hbm [resolvable:$true] %s213_s8 }
  0x1c   : > { %1034 = dma.hbm_to_vmem [thread:$0]  (!%p1470_p4), %s214_s8, 16384, %s216_s10, %s1474_s12, %s1366_s13, %s1367_s14, %s1368_s29  }
  0x1d   : > { %s32_s6 = sadd.s32 1, %s1356_s23  ;;  %s35_s7 = sadd.s32 1, %s1360_s24 }
  0x1e   : > { %p33_p8 = scmp.ge.s32.totalorder %s32_s6, 2  ;;  %s42_s8 = sadd.s32 1, %s1344_s20 }
  0x1f   : > { %p49_p9 = scmp.ne.s32.totalorder %s1344_s20, %s1340_s19  ;;  %p55_p11 = scmp.ne.s32.totalorder %s1340_s19, %s1336_s18 }
  0x20   : > { %s1926_s6 = smov (%p33_p8, %s32_s6), 0  ;;  %s1928_s7 = smov (!%p33_p8, %s35_s7), %s1360_s24 }
  0x21   : > { %1893 = sst [smem:[#allocation17_spill]] %s1926_s6  ;;  %p1502_p10 = por %p50_p0, %p49_p9 }
  0x22   : > { %p37_p12 = scmp.ge.s32.totalorder %s1928_s7, 2  ;;  %p56_p13 = scmp.eq.s32.totalorder %s1486_s30, 0 }
  0x23   : > { %s65_s10 = ssub.s32 %s1356_s23, %s1926_s6  ;;  %p81_p1 = scmp.ne.s32.totalorder %s1328_s16, %s1324_s15 }
  0x24   : > { %s1930_s7 = smov (%p37_p12, %s1928_s7), 0  ;;  %p1518_p3 = por %p56_p13, %p55_p11 }
  0x25   : > { %1895 = sst [smem:[#allocation18_spill]] %s1930_s7  ;;  %p66_p0 = scmp.eq.s32.totalorder %s65_s10, 0 }
  0x26   : > { %s39_s14 = ssub.s32 %s1360_s24, %s1930_s7  ;;  %p1524_p5 = por %p81_p1, %p56_p13 }
  0x27   : > { %p40_p6 = scmp.eq.s32.totalorder %s39_s14, 0  ;;  %p157_p8 = scmp.eq.s32.totalorder %s1486_s30, 3 }
  0x28   : > { %s1532_s15 = scalar_select %p66_p0, %s1332_s17, %s68_s26  }
  0x29   : > { %s1535_s28 = scalar_select %p40_p6, %s1344_s20, %s42_s8  }
  0x2a   : > { %1898 = sst [smem:[#allocation19_spill]] %s1532_s15  ;;  %p1540_p12 = por %p157_p8, %p49_p9 }
  0x2b   : > { %1899 = sst [smem:[#allocation20_spill]] %s1535_s28  ;;  %p163_p13 = scmp.eq.s32.totalorder %s987_s5, 3 }
  0x2c   : > { %s1900_s1 = scalar_select %p1540_p12, 1, 0 }
  0x2d   : > { %s183_s10 = sand.u32 1, %s1344_s20   ;;  %s1015_s7 = sshll.u32 %s1360_s24, 4 }
  0x2e   : > { %1901 = sst [smem:[#allocation21_spill]] %s1900_s1  ;;  %p1549_p1 = por %p163_p13, %p55_p11 }
  0x2f   : > { %s990_s6 = sshll.u32 %s183_s10, 4  ;;  %s192_s15 = scalar_lea.hbm %s1869_s0, %s1015_s7 }
  0x30   : > { %s1902_s14 = scalar_select %p1549_p1, 1, 0 }
  0x31   : > { %s194_s8 = sshll.u32 %s192_s15, 4  ;;  %s187_s28 = scalar_lea.vmem [#allocation3], %s990_s6  ;;  %s195_s8 = int_to_ptr.hbm [resolvable:$true] %s194_s8 }
  0x32   : > { %1903 = sst [smem:[#allocation22_spill]] %s1902_s14  ;;  %s196_s21 = sshll.u32 %s187_s28, 4  ;;  %s197_s21 = int_to_ptr.vmem [resolvable:$true] %s196_s21 }
  0x33   : > { %p1029_p9 = pnand %p1042_p2, %p1502_p10  ;;  %s1904_s5 = sand.u32 1, %s1332_s17  }
  0x34   : > { %s996_s24 = sshll.u32 %s1904_s5, 9  ;;  %s1018_s20 = sshll.u32 %s1356_s23, 9 }
  0x35   : > { %s184_s18 = scalar_lea.sflag [#allocation4], %s183_s10  ;;  %s235_s4 = scalar_lea.hbm %s1871_s2, %s1018_s20 }
  0x36   : > { %1031 = dma.hbm_to_vmem [thread:$0]  (!%p1029_p9), %s195_s8, 256, %s197_s21, %s184_s18  }
  0x37   : > { %s229_s7 = scalar_lea.vmem [#allocation8], %s996_s24  ;;  %s236_s26 = sshll.u32 %s235_s4, 4  ;;  %s237_s26 = int_to_ptr.hbm [resolvable:$true] %s236_s26 }
  0x38   : > { %s238_s15 = sshll.u32 %s229_s7, 4  ;;  %s1369_s6 = smov 256   ;;  %s239_s15 = int_to_ptr.vmem [resolvable:$true] %s238_s15 }
  0x39   : > { %s1370_s28 = smov 16   ;;  %257 = sbr.rel (%p1481_p7) target bundleno = 568 (0x238), region = 36 }
  0x3a   : > { %1037 = dma.hbm_to_vmem [thread:$0]  (!%p1470_p4), %s237_s26, 8192, %s239_s15, %s1474_s12, %s1369_s6, %s1369_s6, %s1370_s28  }
  0x3b   : > { %s1572_s9 = sand.u32 (!%p1481_p7), 1, %s1340_s19  }
  0x3c   : > { %s1001_s1 = sshll.u32 (!%p1481_p7), %s1572_s9, 4  ;;  %s260_s18 = scalar_lea.sflag (!%p1481_p7), [#allocation4], %s1572_s9 }
  0x3d   : > { %s1576_s20 = scalar_lea.vmem (!%p1481_p7), [#allocation3], %s1001_s1 }
  0x3e   : > { %1311 = dma.done.wait (%p1518_p3), %s260_s18, 256  }
  0x3f   : > { %1313 = vsyncadd (%p1518_p3), %s260_s18, 4294967040  ;;  %s269_s21 = sand.u32 1, %s1486_s30   ;;  %s271_s24 = sand.u32 1, %s1328_s16  }
  0x40   : > { %s1002_s11 = sshll.u32 %s271_s24, 10  ;;  %s270_s12 = scalar_lea.sflag [#allocation7], %s269_s21 }
  0x41   : > { %s1584_s27 = scalar_lea.vmem [#allocation6], %s1002_s11 }
  0x42   : > { %1315 = dma.done.wait (%p1524_p5), %s270_s12, 24576  }
  0x43   : > { %1317 = vsyncadd (%p1524_p5), %s270_s12, 4294942720  ;;  %s1003_s10 = sshll.u32 %s271_s24, 9  ;;  %p325_p2 = scmp.lt.s32.totalorder %s1352_s22, 1 }
  0x44   : > { %s1597_s4 = scalar_lea.vmem [#allocation8], %s1003_s10  ;;  %s1599_s7 = scalar_lea.vmem [#allocation9], %s1001_s1 }
  0x45   : > { %s326_s13 = scalar_select %p325_p2, %s1352_s22, 1 }
  0x46   : > { %s1905_s15 = sld [smem:[#allocation15_spill]] }
  0x47   : > { %s1005_s14 = sshll.u32 %s326_s13, 3 }
  0x48   : > { %s1595_s30 = scalar_lea.vmem %s1872_s3, %s1005_s14 }
  0x4c   : > { %p1006_p4 = scmp.ne.s32.totalorder %s1905_s15, 0 }
  0x4e   : > { %332 = sbr.rel (%p1006_p4) target bundleno = 86 (0x56), region = 52 }
  0x53   : > { %v1371_v0 = vmov 0.0  }
  0x54   : > { %333 = vst [vmem:[#allocation2] sm:$0xff] %v1371_v0 }
  0x55   : > { %334 = vst [vmem:[#allocation2 + $0x8] sm:$0xff] %v1371_v0 }
  0x56 PF: > { %v399_v1 = vld [vmem:[%s1584_s27 + $0x1e0] sm:$0xff]  ;;  %v400_v3 = vld [vmem:[%s1584_s27 + $0x1e8] sm:$0xff]  ;;  %s1906_s29 = sld [smem:[#allocation15_spill]] }
  0x57   : > { %v463_v2 = vld [vmem:[%s1584_s27 + $0x3e0] sm:$0xff]  ;;  %467 = vmatpush.msra.mxu0 %v399_v1  ;;  %v464_v4 = vld [vmem:[%s1584_s27 + $0x3e8] sm:$0xff]  ;;  %507 = vmatpush.msra.mxu2 %v400_v3  ;;  %v401_v3 = vld [vmem:[%s1584_s27 + $0x1f0] sm:$0xff] }
  0x58   : > { %487 = vmatpush.msra.mxu1 %v463_v2  ;;  %v395_v5 = vld [vmem:[%s1584_s27 + $0x1c0] sm:$0xff]  ;;  %527 = vmatpush.msra.mxu3 %v464_v4  ;;  %v396_v7 = vld [vmem:[%s1584_s27 + $0x1c8] sm:$0xff]  ;;  %v465_v4 = vld [vmem:[%s1584_s27 + $0x3f0] sm:$0xff] }
  0x59   : > { %v459_v6 = vld [vmem:[%s1584_s27 + $0x3c0] sm:$0xff]  ;;  %v460_v8 = vld [vmem:[%s1584_s27 + $0x3c8] sm:$0xff]  ;;  %468 = vmatpush.msra.mxu0 %v395_v5  ;;  %508 = vmatpush.msra.mxu2 %v396_v7  ;;  %v402_v5 = vld [vmem:[%s1584_s27 + $0x1f8] sm:$0xff] }
  0x5a   : > { %v391_v9 = vld [vmem:[%s1584_s27 + $0x1a0] sm:$0xff]  ;;  %488 = vmatpush.msra.mxu1 %v459_v6  ;;  %v392_v11 = vld [vmem:[%s1584_s27 + $0x1a8] sm:$0xff]  ;;  %528 = vmatpush.msra.mxu3 %v460_v8  ;;  %v466_v6 = vld [vmem:[%s1584_s27 + $0x3f8] sm:$0xff] }
  0x5b   : > { %v455_v10 = vld [vmem:[%s1584_s27 + $0x3a0] sm:$0xff]  ;;  %v456_v12 = vld [vmem:[%s1584_s27 + $0x3a8] sm:$0xff]  ;;  %469 = vmatpush.msra.mxu0 %v391_v9  ;;  %509 = vmatpush.msra.mxu2 %v392_v11  ;;  %v397_v7 = vld [vmem:[%s1584_s27 + $0x1d0] sm:$0xff] }
  0x5c   : > { %v387_v13 = vld [vmem:[%s1584_s27 + $0x180] sm:$0xff]  ;;  %489 = vmatpush.msra.mxu1 %v455_v10  ;;  %v388_v15 = vld [vmem:[%s1584_s27 + $0x188] sm:$0xff]  ;;  %529 = vmatpush.msra.mxu3 %v456_v12  ;;  %v461_v8 = vld [vmem:[%s1584_s27 + $0x3d0] sm:$0xff]  ;;  %p1009_p7 = scmp.ne.s32.totalorder %s1906_s29, 1 }
  0x5d   : > { %v451_v14 = vld [vmem:[%s1584_s27 + $0x380] sm:$0xff]  ;;  %v452_v16 = vld [vmem:[%s1584_s27 + $0x388] sm:$0xff]  ;;  %470 = vmatpush.msra.mxu0 %v387_v13  ;;  %510 = vmatpush.msra.mxu2 %v388_v15  ;;  %v398_v9 = vld [vmem:[%s1584_s27 + $0x1d8] sm:$0xff] }
  0x5e   : > { %v383_v17 = vld [vmem:[%s1584_s27 + $0x160] sm:$0xff]  ;;  %490 = vmatpush.msra.mxu1 %v451_v14  ;;  %v384_v19 = vld [vmem:[%s1584_s27 + $0x168] sm:$0xff]  ;;  %530 = vmatpush.msra.mxu3 %v452_v16  ;;  %v462_v10 = vld [vmem:[%s1584_s27 + $0x3d8] sm:$0xff] }
  0x5f   : > { %v447_v18 = vld [vmem:[%s1584_s27 + $0x360] sm:$0xff]  ;;  %v448_v20 = vld [vmem:[%s1584_s27 + $0x368] sm:$0xff]  ;;  %471 = vmatpush.msra.mxu0 %v383_v17  ;;  %511 = vmatpush.msra.mxu2 %v384_v19  ;;  %v393_v11 = vld [vmem:[%s1584_s27 + $0x1b0] sm:$0xff] }
  0x60   : > { %v379_v21 = vld [vmem:[%s1584_s27 + $0x140] sm:$0xff]  ;;  %491 = vmatpush.msra.mxu1 %v447_v18  ;;  %v380_v23 = vld [vmem:[%s1584_s27 + $0x148] sm:$0xff]  ;;  %531 = vmatpush.msra.mxu3 %v448_v20  ;;  %v457_v12 = vld [vmem:[%s1584_s27 + $0x3b0] sm:$0xff] }
  0x61   : > { %v443_v22 = vld [vmem:[%s1584_s27 + $0x340] sm:$0xff]  ;;  %v444_v24 = vld [vmem:[%s1584_s27 + $0x348] sm:$0xff]  ;;  %472 = vmatpush.msra.mxu0 %v379_v21  ;;  %512 = vmatpush.msra.mxu2 %v380_v23  ;;  %v394_v13 = vld [vmem:[%s1584_s27 + $0x1b8] sm:$0xff] }
  0x62   : > { %v375_v25 = vld [vmem:[%s1584_s27 + $0x120] sm:$0xff]  ;;  %492 = vmatpush.msra.mxu1 %v443_v22  ;;  %v376_v27 = vld [vmem:[%s1584_s27 + $0x128] sm:$0xff]  ;;  %532 = vmatpush.msra.mxu3 %v444_v24  ;;  %v458_v14 = vld [vmem:[%s1584_s27 + $0x3b8] sm:$0xff] }
  0x63   : > { %v439_v26 = vld [vmem:[%s1584_s27 + $0x320] sm:$0xff]  ;;  %v440_v28 = vld [vmem:[%s1584_s27 + $0x328] sm:$0xff]  ;;  %473 = vmatpush.msra.mxu0 %v375_v25  ;;  %513 = vmatpush.msra.mxu2 %v376_v27  ;;  %v389_v15 = vld [vmem:[%s1584_s27 + $0x190] sm:$0xff] }
  0x64   : > { %v371_v29 = vld [vmem:[%s1584_s27 + $0x100] sm:$0xff]  ;;  %493 = vmatpush.msra.mxu1 %v439_v26  ;;  %v372_v31 = vld [vmem:[%s1584_s27 + $0x108] sm:$0xff]  ;;  %533 = vmatpush.msra.mxu3 %v440_v28  ;;  %v453_v16 = vld [vmem:[%s1584_s27 + $0x390] sm:$0xff] }
  0x65   : > { %v435_v30 = vld [vmem:[%s1584_s27 + $0x300] sm:$0xff]  ;;  %v436_v32 = vld [vmem:[%s1584_s27 + $0x308] sm:$0xff]  ;;  %474 = vmatpush.msra.mxu0 %v371_v29  ;;  %514 = vmatpush.msra.mxu2 %v372_v31  ;;  %v390_v17 = vld [vmem:[%s1584_s27 + $0x198] sm:$0xff] }
  0x66   : > { %v367_v33 = vld [vmem:[%s1584_s27 + $0xe0] sm:$0xff]  ;;  %494 = vmatpush.msra.mxu1 %v435_v30  ;;  %v368_v35 = vld [vmem:[%s1584_s27 + $0xe8] sm:$0xff]  ;;  %534 = vmatpush.msra.mxu3 %v436_v32  ;;  %v454_v18 = vld [vmem:[%s1584_s27 + $0x398] sm:$0xff] }
  0x67   : > { %v431_v34 = vld [vmem:[%s1584_s27 + $0x2e0] sm:$0xff]  ;;  %v432_v36 = vld [vmem:[%s1584_s27 + $0x2e8] sm:$0xff]  ;;  %475 = vmatpush.msra.mxu0 %v367_v33  ;;  %515 = vmatpush.msra.mxu2 %v368_v35  ;;  %v385_v19 = vld [vmem:[%s1584_s27 + $0x170] sm:$0xff] }
  0x68   : > { %v363_v37 = vld [vmem:[%s1584_s27 + $0xc0] sm:$0xff]  ;;  %495 = vmatpush.msra.mxu1 %v431_v34  ;;  %v364_v39 = vld [vmem:[%s1584_s27 + $0xc8] sm:$0xff]  ;;  %535 = vmatpush.msra.mxu3 %v432_v36  ;;  %v449_v20 = vld [vmem:[%s1584_s27 + $0x370] sm:$0xff] }
  0x69   : > { %v427_v38 = vld [vmem:[%s1584_s27 + $0x2c0] sm:$0xff]  ;;  %v428_v40 = vld [vmem:[%s1584_s27 + $0x2c8] sm:$0xff]  ;;  %476 = vmatpush.msra.mxu0 %v363_v37  ;;  %516 = vmatpush.msra.mxu2 %v364_v39  ;;  %v386_v21 = vld [vmem:[%s1584_s27 + $0x178] sm:$0xff] }
  0x6a   : > { %v359_v41 = vld [vmem:[%s1584_s27 + $0xa0] sm:$0xff]  ;;  %496 = vmatpush.msra.mxu1 %v427_v38  ;;  %v360_v43 = vld [vmem:[%s1584_s27 + $0xa8] sm:$0xff]  ;;  %536 = vmatpush.msra.mxu3 %v428_v40  ;;  %v450_v22 = vld [vmem:[%s1584_s27 + $0x378] sm:$0xff] }
  0x6b   : > { %v423_v42 = vld [vmem:[%s1584_s27 + $0x2a0] sm:$0xff]  ;;  %v424_v44 = vld [vmem:[%s1584_s27 + $0x2a8] sm:$0xff]  ;;  %477 = vmatpush.msra.mxu0 %v359_v41  ;;  %517 = vmatpush.msra.mxu2 %v360_v43  ;;  %v381_v23 = vld [vmem:[%s1584_s27 + $0x150] sm:$0xff] }
  0x6c   : > { %v355_v45 = vld [vmem:[%s1584_s27 + $0x80] sm:$0xff]  ;;  %497 = vmatpush.msra.mxu1 %v423_v42  ;;  %v356_v47 = vld [vmem:[%s1584_s27 + $0x88] sm:$0xff]  ;;  %537 = vmatpush.msra.mxu3 %v424_v44  ;;  %v445_v24 = vld [vmem:[%s1584_s27 + $0x350] sm:$0xff] }
  0x6d   : > { %v419_v46 = vld [vmem:[%s1584_s27 + $0x280] sm:$0xff]  ;;  %v420_v48 = vld [vmem:[%s1584_s27 + $0x288] sm:$0xff]  ;;  %478 = vmatpush.msra.mxu0 %v355_v45  ;;  %518 = vmatpush.msra.mxu2 %v356_v47  ;;  %v382_v25 = vld [vmem:[%s1584_s27 + $0x158] sm:$0xff] }
  0x6e   : > { %v351_v49 = vld [vmem:[%s1584_s27 + $0x60] sm:$0xff]  ;;  %498 = vmatpush.msra.mxu1 %v419_v46  ;;  %v352_v51 = vld [vmem:[%s1584_s27 + $0x68] sm:$0xff]  ;;  %538 = vmatpush.msra.mxu3 %v420_v48  ;;  %v446_v26 = vld [vmem:[%s1584_s27 + $0x358] sm:$0xff] }
  0x6f   : > { %v415_v50 = vld [vmem:[%s1584_s27 + $0x260] sm:$0xff]  ;;  %v416_v52 = vld [vmem:[%s1584_s27 + $0x268] sm:$0xff]  ;;  %479 = vmatpush.msra.mxu0 %v351_v49  ;;  %519 = vmatpush.msra.mxu2 %v352_v51  ;;  %v377_v27 = vld [vmem:[%s1584_s27 + $0x130] sm:$0xff] }
  0x70   : > { %v347_v53 = vld [vmem:[%s1584_s27 + $0x40] sm:$0xff]  ;;  %499 = vmatpush.msra.mxu1 %v415_v50  ;;  %v348_v55 = vld [vmem:[%s1584_s27 + $0x48] sm:$0xff]  ;;  %539 = vmatpush.msra.mxu3 %v416_v52  ;;  %v441_v28 = vld [vmem:[%s1584_s27 + $0x330] sm:$0xff] }
  0x71   : > { %v411_v54 = vld [vmem:[%s1584_s27 + $0x240] sm:$0xff]  ;;  %v412_v56 = vld [vmem:[%s1584_s27 + $0x248] sm:$0xff]  ;;  %480 = vmatpush.msra.mxu0 %v347_v53  ;;  %520 = vmatpush.msra.mxu2 %v348_v55  ;;  %v378_v29 = vld [vmem:[%s1584_s27 + $0x138] sm:$0xff] }
  0x72   : > { %v343_v57 = vld [vmem:[%s1584_s27 + $0x20] sm:$0xff]  ;;  %500 = vmatpush.msra.mxu1 %v411_v54  ;;  %v344_v59 = vld [vmem:[%s1584_s27 + $0x28] sm:$0xff]  ;;  %540 = vmatpush.msra.mxu3 %v412_v56  ;;  %v442_v30 = vld [vmem:[%s1584_s27 + $0x338] sm:$0xff] }
  0x73   : > { %v407_v58 = vld [vmem:[%s1584_s27 + $0x220] sm:$0xff]  ;;  %v408_v60 = vld [vmem:[%s1584_s27 + $0x228] sm:$0xff]  ;;  %481 = vmatpush.msra.mxu0 %v343_v57  ;;  %521 = vmatpush.msra.mxu2 %v344_v59  ;;  %v373_v31 = vld [vmem:[%s1584_s27 + $0x110] sm:$0xff] }
  0x74   : > { %v339_v61 = vld [vmem:[%s1584_s27] sm:$0xff]  ;;  %501 = vmatpush.msra.mxu1 %v407_v58  ;;  %v340_v63 = vld [vmem:[%s1584_s27 + $0x8] sm:$0xff]  ;;  %541 = vmatpush.msra.mxu3 %v408_v60  ;;  %v437_v32 = vld [vmem:[%s1584_s27 + $0x310] sm:$0xff] }
  0x75   : > { %v403_v62 = vld [vmem:[%s1584_s27 + $0x200] sm:$0xff]  ;;  %v404_v0 = vld [vmem:[%s1584_s27 + $0x208] sm:$0xff]  ;;  %482 = vmatpush.msra.mxu0 %v339_v61  ;;  %522 = vmatpush.msra.mxu2 %v340_v63  ;;  %v374_v33 = vld [vmem:[%s1584_s27 + $0x118] sm:$0xff] }
  0x76   : > { %v1667_v1 = vld [vmem:[%s1576_s20] sm:$0xff]  ;;  %v1670_v2 = vld [vmem:[%s1576_s20 + $0x8] sm:$0xff]  ;;  %502 = vmatpush.msra.mxu1 %v403_v62  ;;  %542 = vmatpush.msra.mxu3 %v404_v0 }
  0x77   : > { %483 = vmatmul.f32.vlgmr.msra.gmra.mxu0 %v1667_v1  ;;  %503 = vmatmul.f32.vlgmr.msra.gmra.mxu1 %v1670_v2  ;;  %v438_v34 = vld [vmem:[%s1584_s27 + $0x318] sm:$0xff]  ;;  %v369_v35 = vld [vmem:[%s1584_s27 + $0xf0] sm:$0xff] }
  0x78   : > { %523 = vmatmul.f32.vlgmr.msra.gmra.mxu2 %v1667_v1  ;;  %543 = vmatmul.f32.vlgmr.msra.gmra.mxu3 %v1670_v2  ;;  %v433_v36 = vld [vmem:[%s1584_s27 + $0x2f0] sm:$0xff]  ;;  %v370_v37 = vld [vmem:[%s1584_s27 + $0xf8] sm:$0xff] }
  0x79   : > { %547 = vmatpush.msrb.mxu0 %v401_v3  ;;  %567 = vmatpush.msrb.mxu1 %v465_v4  ;;  %v434_v38 = vld [vmem:[%s1584_s27 + $0x2f8] sm:$0xff]  ;;  %v365_v39 = vld [vmem:[%s1584_s27 + $0xd0] sm:$0xff] }
  0x7a   : > { %587 = vmatpush.msrb.mxu2 %v402_v5  ;;  %607 = vmatpush.msrb.mxu3 %v466_v6  ;;  %v429_v40 = vld [vmem:[%s1584_s27 + $0x2d0] sm:$0xff]  ;;  %v366_v41 = vld [vmem:[%s1584_s27 + $0xd8] sm:$0xff] }
  0x7b   : > { %548 = vmatpush.msrb.mxu0 %v397_v7  ;;  %568 = vmatpush.msrb.mxu1 %v461_v8  ;;  %v430_v42 = vld [vmem:[%s1584_s27 + $0x2d8] sm:$0xff]  ;;  %v361_v43 = vld [vmem:[%s1584_s27 + $0xb0] sm:$0xff]  ;;  %v697_v7 = vld [vmem:[%s1597_s4 + $0xe0] sm:$0xff] }
  0x7c   : > { %588 = vmatpush.msrb.mxu2 %v398_v9  ;;  %608 = vmatpush.msrb.mxu3 %v462_v10  ;;  %v425_v44 = vld [vmem:[%s1584_s27 + $0x2b0] sm:$0xff]  ;;  %v362_v45 = vld [vmem:[%s1584_s27 + $0xb8] sm:$0xff]  ;;  %v698_v8 = vld [vmem:[%s1597_s4 + $0xe8] sm:$0xff] }
  0x7d   : > { %549 = vmatpush.msrb.mxu0 %v393_v11  ;;  %569 = vmatpush.msrb.mxu1 %v457_v12  ;;  %v426_v46 = vld [vmem:[%s1584_s27 + $0x2b8] sm:$0xff]  ;;  %v357_v47 = vld [vmem:[%s1584_s27 + $0x90] sm:$0xff]  ;;  %v694_v11 = vld [vmem:[%s1597_s4 + $0xc8] sm:$0xff] }
  0x7e   : > { %589 = vmatpush.msrb.mxu2 %v394_v13  ;;  %609 = vmatpush.msrb.mxu3 %v458_v14  ;;  %v421_v48 = vld [vmem:[%s1584_s27 + $0x290] sm:$0xff]  ;;  %v358_v49 = vld [vmem:[%s1584_s27 + $0x98] sm:$0xff]  ;;  %v729_v14 = vld [vmem:[%s1597_s4 + $0x1e0] sm:$0xff] }
  0x7f   : > { %550 = vmatpush.msrb.mxu0 %v389_v15  ;;  %570 = vmatpush.msrb.mxu1 %v453_v16  ;;  %v422_v50 = vld [vmem:[%s1584_s27 + $0x298] sm:$0xff]  ;;  %v353_v51 = vld [vmem:[%s1584_s27 + $0x70] sm:$0xff]  ;;  %v730_v16 = vld [vmem:[%s1597_s4 + $0x1e8] sm:$0xff] }
  0x80   : > { %590 = vmatpush.msrb.mxu2 %v390_v17  ;;  %610 = vmatpush.msrb.mxu3 %v454_v18  ;;  %v417_v52 = vld [vmem:[%s1584_s27 + $0x270] sm:$0xff]  ;;  %v354_v53 = vld [vmem:[%s1584_s27 + $0x78] sm:$0xff]  ;;  %v689_v17 = vld [vmem:[%s1597_s4 + $0xa0] sm:$0xff] }
  0x81   : > { %551 = vmatpush.msrb.mxu0 %v385_v19  ;;  %571 = vmatpush.msrb.mxu1 %v449_v20  ;;  %v418_v54 = vld [vmem:[%s1584_s27 + $0x278] sm:$0xff]  ;;  %v349_v55 = vld [vmem:[%s1584_s27 + $0x50] sm:$0xff]  ;;  %v690_v19 = vld [vmem:[%s1597_s4 + $0xa8] sm:$0xff] }
  0x82   : > { %591 = vmatpush.msrb.mxu2 %v386_v21  ;;  %611 = vmatpush.msrb.mxu3 %v450_v22  ;;  %v413_v56 = vld [vmem:[%s1584_s27 + $0x250] sm:$0xff]  ;;  %v350_v57 = vld [vmem:[%s1584_s27 + $0x58] sm:$0xff]  ;;  %v725_v22 = vld [vmem:[%s1597_s4 + $0x1c0] sm:$0xff] }
  0x83   : > { %552 = vmatpush.msrb.mxu0 %v381_v23  ;;  %572 = vmatpush.msrb.mxu1 %v445_v24  ;;  %v414_v58 = vld [vmem:[%s1584_s27 + $0x258] sm:$0xff]  ;;  %v345_v59 = vld [vmem:[%s1584_s27 + $0x30] sm:$0xff]  ;;  %v726_v24 = vld [vmem:[%s1597_s4 + $0x1c8] sm:$0xff] }
  0x84   : > { %592 = vmatpush.msrb.mxu2 %v382_v25  ;;  %612 = vmatpush.msrb.mxu3 %v446_v26  ;;  %v409_v60 = vld [vmem:[%s1584_s27 + $0x230] sm:$0xff]  ;;  %v346_v61 = vld [vmem:[%s1584_s27 + $0x38] sm:$0xff]  ;;  %v685_v25 = vld [vmem:[%s1597_s4 + $0x80] sm:$0xff] }
  0x85   : > { %553 = vmatpush.msrb.mxu0 %v377_v27  ;;  %573 = vmatpush.msrb.mxu1 %v441_v28  ;;  %v410_v62 = vld [vmem:[%s1584_s27 + $0x238] sm:$0xff]  ;;  %v341_v63 = vld [vmem:[%s1584_s27 + $0x10] sm:$0xff]  ;;  %v686_v27 = vld [vmem:[%s1597_s4 + $0x88] sm:$0xff] }
  0x86   : > { %593 = vmatpush.msrb.mxu2 %v378_v29  ;;  %613 = vmatpush.msrb.mxu3 %v442_v30  ;;  %v405_v0 = vld [vmem:[%s1584_s27 + $0x210] sm:$0xff]  ;;  %v342_v3 = vld [vmem:[%s1584_s27 + $0x18] sm:$0xff]  ;;  %v721_v30 = vld [vmem:[%s1597_s4 + $0x1a0] sm:$0xff] }
  0x87   : > { %554 = vmatpush.msrb.mxu0 %v373_v31  ;;  %574 = vmatpush.msrb.mxu1 %v437_v32  ;;  %v406_v4 = vld [vmem:[%s1584_s27 + $0x218] sm:$0xff]  ;;  %v699_v5 = vld [vmem:[%s1597_s4 + $0xf0] sm:$0xff]  ;;  %v722_v32 = vld [vmem:[%s1597_s4 + $0x1a8] sm:$0xff] }
  0x88   : > { %594 = vmatpush.msrb.mxu2 %v374_v33  ;;  %614 = vmatpush.msrb.mxu3 %v438_v34  ;;  %v700_v6 = vld [vmem:[%s1597_s4 + $0xf8] sm:$0xff]  ;;  %v695_v9 = vld [vmem:[%s1597_s4 + $0xd0] sm:$0xff]  ;;  %v681_v33 = vld [vmem:[%s1597_s4 + $0x60] sm:$0xff] }
  0x89   : > { %555 = vmatpush.msrb.mxu0 %v369_v35  ;;  %575 = vmatpush.msrb.mxu1 %v433_v36  ;;  %v696_v10 = vld [vmem:[%s1597_s4 + $0xd8] sm:$0xff]  ;;  %v691_v13 = vld [vmem:[%s1597_s4 + $0xb0] sm:$0xff]  ;;  %v682_v35 = vld [vmem:[%s1597_s4 + $0x68] sm:$0xff] }
  0x8a   : > { %595 = vmatpush.msrb.mxu2 %v370_v37  ;;  %615 = vmatpush.msrb.mxu3 %v434_v38  ;;  %v732_v12 = vld [vmem:[%s1597_s4 + $0x1f8] sm:$0xff]  ;;  %v727_v18 = vld [vmem:[%s1597_s4 + $0x1d0] sm:$0xff]  ;;  %v717_v38 = vld [vmem:[%s1597_s4 + $0x180] sm:$0xff] }
  0x8b   : > { %556 = vmatpush.msrb.mxu0 %v365_v39  ;;  %576 = vmatpush.msrb.mxu1 %v429_v40  ;;  %v692_v15 = vld [vmem:[%s1597_s4 + $0xb8] sm:$0xff]  ;;  %v687_v21 = vld [vmem:[%s1597_s4 + $0x90] sm:$0xff]  ;;  %v718_v40 = vld [vmem:[%s1597_s4 + $0x188] sm:$0xff] }
  0x8c   : > { %596 = vmatpush.msrb.mxu2 %v366_v41  ;;  %616 = vmatpush.msrb.mxu3 %v430_v42  ;;  %v728_v20 = vld [vmem:[%s1597_s4 + $0x1d8] sm:$0xff]  ;;  %v723_v26 = vld [vmem:[%s1597_s4 + $0x1b0] sm:$0xff]  ;;  %v677_v41 = vld [vmem:[%s1597_s4 + $0x40] sm:$0xff] }
  0x8d   : > { %557 = vmatpush.msrb.mxu0 %v361_v43  ;;  %577 = vmatpush.msrb.mxu1 %v425_v44  ;;  %v688_v23 = vld [vmem:[%s1597_s4 + $0x98] sm:$0xff]  ;;  %v683_v29 = vld [vmem:[%s1597_s4 + $0x70] sm:$0xff]  ;;  %v678_v43 = vld [vmem:[%s1597_s4 + $0x48] sm:$0xff] }
  0x8e   : > { %597 = vmatpush.msrb.mxu2 %v362_v45  ;;  %617 = vmatpush.msrb.mxu3 %v426_v46  ;;  %v724_v28 = vld [vmem:[%s1597_s4 + $0x1b8] sm:$0xff]  ;;  %v719_v34 = vld [vmem:[%s1597_s4 + $0x190] sm:$0xff] }
  0x8f   : > { %558 = vmatpush.msrb.mxu0 %v357_v47  ;;  %578 = vmatpush.msrb.mxu1 %v421_v48  ;;  %v684_v31 = vld [vmem:[%s1597_s4 + $0x78] sm:$0xff]  ;;  %v679_v37 = vld [vmem:[%s1597_s4 + $0x50] sm:$0xff]  ;;  %v713_v48 = vld [vmem:[%s1597_s4 + $0x160] sm:$0xff] }
  0x90   : > { %598 = vmatpush.msrb.mxu2 %v358_v49  ;;  %618 = vmatpush.msrb.mxu3 %v422_v50  ;;  %v720_v36 = vld [vmem:[%s1597_s4 + $0x198] sm:$0xff]  ;;  %v715_v42 = vld [vmem:[%s1597_s4 + $0x170] sm:$0xff] }
  0x91   : > { %559 = vmatpush.msrb.mxu0 %v353_v51  ;;  %579 = vmatpush.msrb.mxu1 %v417_v52  ;;  %v680_v39 = vld [vmem:[%s1597_s4 + $0x58] sm:$0xff]  ;;  %v675_v47 = vld [vmem:[%s1597_s4 + $0x30] sm:$0xff]  ;;  %v714_v51 = vld [vmem:[%s1597_s4 + $0x168] sm:$0xff] }
  0x92   : > { %599 = vmatpush.msrb.mxu2 %v354_v53  ;;  %619 = vmatpush.msrb.mxu3 %v418_v54  ;;  %v716_v44 = vld [vmem:[%s1597_s4 + $0x178] sm:$0xff]  ;;  %v673_v52 = vld [vmem:[%s1597_s4 + $0x20] sm:$0xff]  ;;  %v711_v53 = vld [vmem:[%s1597_s4 + $0x150] sm:$0xff] }
  0x93   : > { %560 = vmatpush.msrb.mxu0 %v349_v55  ;;  %580 = vmatpush.msrb.mxu1 %v413_v56  ;;  %v676_v49 = vld [vmem:[%s1597_s4 + $0x38] sm:$0xff]  ;;  %v674_v54 = vld [vmem:[%s1597_s4 + $0x28] sm:$0xff] }
  0x94   : > { %600 = vmatpush.msrb.mxu2 %v350_v57  ;;  %620 = vmatpush.msrb.mxu3 %v414_v58  ;;  %v712_v56 = vld [vmem:[%s1597_s4 + $0x158] sm:$0xff]  ;;  %v671_v57 = vld [vmem:[%s1597_s4 + $0x10] sm:$0xff]  ;;  %v709_v58 = vld [vmem:[%s1597_s4 + $0x140] sm:$0xff] }
  0x95   : > { %561 = vmatpush.msrb.mxu0 %v345_v59  ;;  %581 = vmatpush.msrb.mxu1 %v409_v60  ;;  %v672_v59 = vld [vmem:[%s1597_s4 + $0x18] sm:$0xff]  ;;  %v710_v60 = vld [vmem:[%s1597_s4 + $0x148] sm:$0xff] }
  0x96   : > { %601 = vmatpush.msrb.mxu2 %v346_v61  ;;  %621 = vmatpush.msrb.mxu3 %v410_v62  ;;  %v669_v61 = vld [vmem:[%s1597_s4] sm:$0xff]  ;;  %v707_v62 = vld [vmem:[%s1597_s4 + $0x130] sm:$0xff] }
  0x97   : > { %562 = vmatpush.msrb.mxu0 %v341_v63  ;;  %582 = vmatpush.msrb.mxu1 %v405_v0  ;;  %v670_v63 = vld [vmem:[%s1597_s4 + $0x8] sm:$0xff] }
  0x98   : > { %602 = vmatpush.msrb.mxu2 %v342_v3  ;;  %622 = vmatpush.msrb.mxu3 %v406_v4  ;;  %v708_v4 = vld [vmem:[%s1597_s4 + $0x138] sm:$0xff] }
  0x99   : > { %563 = vmatmul.f32.vlgmr.msrb.gmra.mxu0 %v1667_v1  ;;  %583 = vmatmul.f32.vlgmr.msrb.gmra.mxu1 %v1670_v2 }
  0x9a   : > { %603 = vmatmul.f32.vlgmr.msrb.gmra.mxu2 %v1667_v1  ;;  %623 = vmatmul.f32.vlgmr.msrb.gmra.mxu3 %v1670_v2  ;;  %v693_v1 = vld [vmem:[%s1597_s4 + $0xc0] sm:$0xff]  ;;  %v731_v2 = vld [vmem:[%s1597_s4 + $0x1f0] sm:$0xff] }
  0x9b   : > { %733 = vmatpush.msra.mxu0 %v699_v5  ;;  %773 = vmatpush.msra.mxu2 %v700_v6  ;;  %v705_v6 = vld [vmem:[%s1597_s4 + $0x120] sm:$0xff] }
  0x9c   : > { %753 = vmatpush.msra.mxu1 %v731_v2  ;;  %793 = vmatpush.msra.mxu3 %v732_v12  ;;  %v702_v12 = vld [vmem:[%s1597_s4 + $0x108] sm:$0xff] }
  0x9d   : > { %734 = vmatpush.msra.mxu0 %v697_v7  ;;  %774 = vmatpush.msra.mxu2 %v698_v8  ;;  %v706_v7 = vld [vmem:[%s1597_s4 + $0x128] sm:$0xff] }
  0x9e   : > { %754 = vmatpush.msra.mxu1 %v729_v14  ;;  %794 = vmatpush.msra.mxu3 %v730_v16 }
  0x9f   : > { %735 = vmatpush.msra.mxu0 %v695_v9  ;;  %775 = vmatpush.msra.mxu2 %v696_v10  ;;  %v703_v9 = vld [vmem:[%s1597_s4 + $0x110] sm:$0xff]  ;;  %v704_v10 = vld [vmem:[%s1597_s4 + $0x118] sm:$0xff] }
  0xa0   : > { %755 = vmatpush.msra.mxu1 %v727_v18  ;;  %795 = vmatpush.msra.mxu3 %v728_v20 }
  0xa1   : > { %736 = vmatpush.msra.mxu0 %v693_v1  ;;  %776 = vmatpush.msra.mxu2 %v694_v11  ;;  %v701_v11 = vld [vmem:[%s1597_s4 + $0x100] sm:$0xff] }
  0xa2   : > { %756 = vmatpush.msra.mxu1 %v725_v22  ;;  %796 = vmatpush.msra.mxu3 %v726_v24 }
  0xa3   : > { %737 = vmatpush.msra.mxu0 %v691_v13  ;;  %777 = vmatpush.msra.mxu2 %v692_v15 }
  0xa4   : > { %757 = vmatpush.msra.mxu1 %v723_v26  ;;  %797 = vmatpush.msra.mxu3 %v724_v28 }
  0xa5   : > { %738 = vmatpush.msra.mxu0 %v689_v17  ;;  %778 = vmatpush.msra.mxu2 %v690_v19 }
  0xa6   : > { %758 = vmatpush.msra.mxu1 %v721_v30  ;;  %798 = vmatpush.msra.mxu3 %v722_v32 }
  0xa7   : > { %739 = vmatpush.msra.mxu0 %v687_v21  ;;  %779 = vmatpush.msra.mxu2 %v688_v23 }
  0xa8   : > { %759 = vmatpush.msra.mxu1 %v719_v34  ;;  %799 = vmatpush.msra.mxu3 %v720_v36 }
  0xa9   : > { %740 = vmatpush.msra.mxu0 %v685_v25  ;;  %780 = vmatpush.msra.mxu2 %v686_v27 }
  0xaa   : > { %760 = vmatpush.msra.mxu1 %v717_v38  ;;  %800 = vmatpush.msra.mxu3 %v718_v40 }
  0xab   : > { %741 = vmatpush.msra.mxu0 %v683_v29  ;;  %781 = vmatpush.msra.mxu2 %v684_v31 }
  0xac   : > { %761 = vmatpush.msra.mxu1 %v715_v42  ;;  %801 = vmatpush.msra.mxu3 %v716_v44 }
  0xad   : > { %742 = vmatpush.msra.mxu0 %v681_v33  ;;  %782 = vmatpush.msra.mxu2 %v682_v35 }
  0xae   : > { %762 = vmatpush.msra.mxu1 %v713_v48  ;;  %802 = vmatpush.msra.mxu3 %v714_v51  ;;  %v336_v51 = vld [vmem:[#allocation2 + $0x8] sm:$0xff] }
  0xaf   : > { %743 = vmatpush.msra.mxu0 %v679_v37  ;;  %783 = vmatpush.msra.mxu2 %v680_v39 }
  0xb0   : > { %763 = vmatpush.msra.mxu1 %v711_v53  ;;  %803 = vmatpush.msra.mxu3 %v712_v56 }
  0xb1   : > { %744 = vmatpush.msra.mxu0 %v677_v41  ;;  %784 = vmatpush.msra.mxu2 %v678_v43 }
  0xb2   : > { %764 = vmatpush.msra.mxu1 %v709_v58  ;;  %804 = vmatpush.msra.mxu3 %v710_v60 }
  0xb3   : > { %745 = vmatpush.msra.mxu0 %v675_v47  ;;  %785 = vmatpush.msra.mxu2 %v676_v49 }
  0xb4   : > { %765 = vmatpush.msra.mxu1 %v707_v62  ;;  %805 = vmatpush.msra.mxu3 %v708_v4 }
  0xb5   : > { %746 = vmatpush.msra.mxu0 %v673_v52  ;;  %786 = vmatpush.msra.mxu2 %v674_v54 }
  0xb6   : > { %766 = vmatpush.msra.mxu1 %v705_v6  ;;  %806 = vmatpush.msra.mxu3 %v706_v7 }
  0xb7   : > { %747 = vmatpush.msra.mxu0 %v671_v57  ;;  %787 = vmatpush.msra.mxu2 %v672_v59 }
  0xb8   : > { %767 = vmatpush.msra.mxu1 %v703_v9  ;;  %807 = vmatpush.msra.mxu3 %v704_v10 }
  0xb9   : > { %748 = vmatpush.msra.mxu0 %v669_v61  ;;  %788 = vmatpush.msra.mxu2 %v670_v63 }
  0xba   : > { %768 = vmatpush.msra.mxu1 %v701_v11  ;;  %808 = vmatpush.msra.mxu3 %v702_v12 }
  0xf4   : > { %v484_v45 = vpop.f32.mrf.mxu0  ;;  %v504_v46 = vpop.f32.mrf.mxu1 }
  0xf5   : > { %v1789_v50 = vadd.f32 %v504_v46, %v484_v45  ;;  %v335_v46 = vld [vmem:[#allocation2] sm:$0xff] }
  0xf7   : > { %v1007_v55 = vmul.f32 -1.442695, %v1789_v50 }
  0xf9   : > { %1139 = vpow2.f32 %v1007_v55 }
  0xfb   : > { %v524_v0 = vpop.f32.mrf.mxu2  ;;  %v544_v3 = vpop.f32.mrf.mxu3 }
  0xfc   : > { %v545_v5 = vadd.f32 %v544_v3, %v524_v0 }
  0xfe   : > { %v1008_v8 = vmul.f32 -1.442695, %v545_v5 }
  0xff   : > { %v1140_v1 = vpop.eup %1139 }
 0x100   : > { %v633_v2 = vadd.f32 1.0, %v1140_v1  ;;  %1141 = vpow2.f32 %v1008_v8 }
 0x102   : > { %1143 = vrcp.f32 %v633_v2  ;;  %v646_v18 = vand.u32 2147483648, %v633_v2  ;;  %vm640_vm0 = vweird.f32 %v633_v2  ;;  %v644_v20 = vand.u32 2147483647, %v633_v2 }
 0x104   : > { %v647_v23 = vor.u32 1.1754944e-38, %v646_v18  ;;  %vm645_vm3 = vcmp.eq.f32.partialorder %v644_v20, 8.507059e+37 }
 0x106   : > { %v1142_v13 = vpop.eup %1141 }
 0x107   : > { %v634_v14 = vadd.f32 1.0, %v1142_v13 }
 0x108   : > { %v1144_v15 = vpop.eup %1143 }
 0x109   : > { %v636_v16 = vmul.f32 %v1144_v15, %v633_v2  ;;  %1145 = vrcp.f32 %v634_v14  ;;  %vm641_vm1 = vweird.f32 %v1144_v15  ;;  %v661_v28 = vand.u32 2147483648, %v634_v14 }
 0x10a   : > { %vm642_vm2 = vmor %vm640_vm0, %vm641_vm1  ;;  %v659_v30 = vand.u32 2147483647, %v634_v14  ;;  %vm655_vm5 = vweird.f32 %v634_v14 }
 0x10b   : > { %v637_v17 = vsub.f32 1.0, %v636_v16  ;;  %v662_v35 = vor.u32 1.1754944e-38, %v661_v28 }
 0x10c   : > { %vm660_vm7 = vcmp.eq.f32.partialorder %v659_v30, 8.507059e+37 }
 0x10d   : > { %v638_v19 = vmul.f32 %v1144_v15, %v637_v17 }
 0x10f   : > { %v1146_v21 = vpop.eup %1145  ;;  %v639_v22 = vadd.f32 %v1144_v15, %v638_v19 }
 0x110   : > { %v651_v24 = vmul.f32 %v1146_v21, %v634_v14  ;;  %vm656_vm4 = vweird.f32 %v1146_v21 }
 0x111   : > { %v643_v25 = vsel %vm642_vm2, %v1144_v15, %v639_v22  ;;  %vm657_vm6 = vmor %vm655_vm5, %vm656_vm4 }
 0x112   : > { %v648_v26 = vsel %vm645_vm3, %v647_v23, %v643_v25  ;;  %v652_v27 = vsub.f32 1.0, %v651_v24 }
 0x113   : > { %v665_v31 = vmul.f32 %v648_v26, %v1789_v50 }
 0x114   : > { %v653_v29 = vmul.f32 %v1146_v21, %v652_v27 }
 0x116   : > { %v654_v32 = vadd.f32 %v1146_v21, %v653_v29  ;;  %v564_v33 = vpop.f32.mrf.mxu0  ;;  %v584_v34 = vpop.f32.mrf.mxu1 }
 0x117   : > { %v585_v36 = vadd.f32 %v584_v34, %v564_v33 }
 0x118   : > { %v658_v37 = vsel %vm657_vm6, %v1146_v21, %v654_v32 }
 0x119   : > { %v663_v38 = vsel %vm660_vm7, %v662_v35, %v658_v37  ;;  %v667_v39 = vmul.f32 %v665_v31, %v585_v36 }
 0x11a   : > { %v666_v40 = vmul.f32 %v663_v38, %v545_v5 }
 0x11b   : > { %749 = vmatmul.f32.vlgmr.msra.gmra.mxu0 %v667_v39  ;;  %789 = vmatmul.f32.vlgmr.msra.gmra.mxu2 %v667_v39 }
 0x11d   : > { %v604_v41 = vpop.f32.mrf.mxu2  ;;  %v624_v42 = vpop.f32.mrf.mxu3 }
 0x11e   : > { %v625_v43 = vadd.f32 %v624_v42, %v604_v41 }
 0x120   : > { %v668_v44 = vmul.f32 %v666_v40, %v625_v43 }
 0x122   : > { %769 = vmatmul.f32.vlgmr.msra.gmra.mxu1 %v668_v44  ;;  %809 = vmatmul.f32.vlgmr.msra.gmra.mxu3 %v668_v44 }
 0x198   : > { %v750_v45 = vpop.f32.mrf.mxu0 }
 0x19e   : > { %v790_v50 = vpop.f32.mrf.mxu2 }
 0x19f   : > { %v770_v47 = vpop.f32.mrf.mxu1 }
 0x1a0   : > { %v771_v48 = vadd.f32 %v770_v47, %v750_v45 }
 0x1a2   : > { %v813_v49 = vadd.f32 %v771_v48, %v335_v46 }
 0x1a4   : > { %815 = vst [vmem:[#allocation2] sm:$0xff] %v813_v49 }
 0x1a5   : > { %v810_v52 = vpop.f32.mrf.mxu3 }
 0x1a6   : > { %v811_v53 = vadd.f32 %v810_v52, %v790_v50  ;;  %820 = sbr.rel (%p1009_p7) target bundleno = 548 (0x224), region = 56 }
 0x1a8   : > { %v814_v54 = vadd.f32 %v811_v53, %v336_v51 }
 0x1aa   : > { %816 = vst [vmem:[#allocation2 + $0x8] sm:$0xff] %v814_v54 }
 0x1ab   : > { %v823_v55 = vld [vmem:[%s1595_s30] sm:$0xff]  ;;  %v1372_v56 = vmov 0  }
 0x1ac   : > { %1147 = vset.pattern.permute.xlu0 %v1372_v56  ;;  %v821_v57 = vld [vmem:[#allocation2] sm:$0xff] }
 0x1ad   : > { %826 = vperm.xlu0 %1147, %v823_v55  }
 0x1b1   : > { %v822_v58 = vld [vmem:[#allocation2 + $0x8] sm:$0xff] }
 0x21f   : > { %v827_v59 = vpop.permute.xlu0 %826 }
 0x220   : > { %v829_v60 = vmul.f32 %v827_v59, %v821_v57  ;;  %v830_v61 = vmul.f32 %v827_v59, %v822_v58 }
 0x222   : > { %831 = vst [vmem:[%s1599_s7] sm:$0xff] %v829_v60 }
 0x223   : > { %832 = vst [vmem:[%s1599_s7 + $0x8] sm:$0xff] %v830_v61 }
 0x224 PF: > { %s1019_s6 = sshll.u32 %s1352_s22, 4  ;;  %s1908_s18 = sld [smem:[#allocation24_spill]] }
 0x225   : > { %s847_s21 = sshll.u32 %s1599_s7, 4  ;;  %s834_s12 = scalar_lea.sflag [#allocation5], %s1572_s9  ;;  %s848_s21 = int_to_ptr.vmem [resolvable:$true] %s847_s21 }
 0x22a   : > { %s1909_s11 = smov %s1908_s18  ;;  %s845_s20 = scalar_lea.hbm %s1908_s18, %s1019_s6 }
 0x22b   : > { %s849_s24 = sshll.u32 %s845_s20, 4  ;;  %s1258_s22 = scalar_lea.hbm %s1909_s11, 32  ;;  %s850_s24 = int_to_ptr.hbm [resolvable:$true] %s849_s24 }
 0x22c   : > { %s1252_s27 = sshra.s32 %s850_s24, 4  ;;  %s1253_s27 = int_to_ptr.hbm [resolvable:$true] %s1252_s27 }
 0x22d   : > { %s1254_s10 = scalar_lea.hbm %s1253_s27, 16  ;;  %p1259_p0 = scmp.lt.s32.totalorder %s1253_s27, %s1909_s11 }
 0x22e   : > { %p1255_p10 = scmp.ne.s32.totalorder %s1253_s27, %s1254_s10  ;;  %p1260_p5 = scmp.lt.s32.totalorder %s1258_s22, %s1254_s10 }
 0x230   : > { %p1256_p11 = pnand %p1255_p10, %p1540_p12  ;;  %p1261_p6 = por %p1260_p5, %p1259_p0 }
 0x232   : > { %p1257_p3 = pneg %p1256_p11 }
 0x234   : > { %p1262_p8 = pnand %p1261_p6, %p1257_p3 }
 0x236   : > { %1265 = shalt.err (!%p1262_p8)
}
 0x237   : > { %1026 = dma.vmem_to_hbm [thread:$0]  (%p1540_p12), %s848_s21, 256, %s850_s24, %s834_s12  }
 0x238 PF: > { %s1910_s9 = sld [smem:[#allocation13_spill]]  ;;  %p1043_p13 = scmp.ge.s32.totalorder %s1364_s25, 2 }
 0x23a   : > { %p1039_p9 = pnand %p1043_p13, %p1549_p1 }
 0x23c   : > { %p1040_p2 = pneg %p1039_p9 }
 0x23e   : > { %s861_s4 = sand.u32 1, %s1910_s9  }
 0x23f   : > { %s862_s7 = scalar_lea.sflag [#allocation5], %s861_s4 }
 0x240   : > { %1319 = dma.done.wait (%p1040_p2), %s862_s7, 256  }
 0x241   : > { %1321 = vsyncadd (%p1040_p2), %s862_s7, 4294967040  ;;  %s23_s25 = sadd.s32 1, %s1364_s25   ;;  %s1912_s29 = sld [smem:[#allocation19_spill]] }
 0x242   : > { %p20_p4 = scmp.ge.s32.totalorder %s23_s25, 6   ;;  %s1913_s26 = sld [smem:[#allocation14_spill]] }
 0x243   : > { %s1914_s20 = sld [smem:[#allocation20_spill]]  ;;  %s1918_s15 = smov %s1328_s16 }
 0x244   : > { %s1915_s22 = sld [smem:[#allocation16_spill]]  ;;  %s1919_s16 = smov %s1332_s17 }
 0x245   : > { %s1916_s6 = sld [smem:[#allocation17_spill]]  ;;  %s1921_s18 = smov %s1340_s19 }
 0x246   : > { %s1917_s24 = sld [smem:[#allocation18_spill]]  ;;  %s1923_s21 = smov %s1356_s23 }
 0x247   : > { %s1920_s17 = smov %s1912_s29  ;;  %22 = sbr.rel (!%p20_p4) target bundleno = 14 (0xe), region = 116 }
 0x248   : > { %s1922_s19 = smov %s1913_s26 }
 0x24b   : > { %s1924_s23 = smov %s1916_s6 }
 0x24c   :  { %868 = vsyncpa [#allocation4], 1 }
 0x24d   :  { %870 = vsyncpa [#allocation4 + $0x1], 1 }
 0x24e   :  { %871 = vsyncpa [#allocation7], 1 }
 0x24f   :  { %873 = vsyncpa [#allocation7 + $0x1], 1 }
 0x250   :  { %874 = vsyncpa [#allocation5], 1 }
 0x251   :  { %876 = vsyncpa [#allocation5 + $0x1], 1 }

</bundles_post_ra>
